<compile_context>
chip_gen: v7x
topology: tpu7x:2x2x1
jax: 0.10.0
libtpu: 0.0.40
codegen_flags: <defaults>
</compile_context>

<pallas_src>
import functools

import jax
import jax.numpy as jnp
from jax import lax
from jax.experimental import pallas as pl
from jax.experimental.pallas import tpu as pltpu

_EPS = 1e-5


def _cond_norm_kernel(x_ref, gb_ref, o_ref, *, hw, groups):
    """x_ref/o_ref: (N, TCg, L) with L = groups*hw; gb_ref: (N, TCg, 2*groups).

    Channel c = cg*groups + g lives in lane segment [g*hw, (g+1)*hw) of row cg;
    its (gamma, beta) sit at lanes (2g, 2g+1) of gb.  BatchNorm statistics are
    taken over all N samples and the hw pixels of that segment (training-mode,
    biased variance), then out = gamma * (x - mean) * rsqrt(var + eps) + beta.
    """
    n = x_ref.shape[0]
    inv_n = 1.0 / (n * hw)
    gb = gb_ref[...].astype(jnp.float32)                         # (N, TCg, 2G)

    for g in range(groups):                                      # static unroll, G<=8
        sl = slice(None) if groups == 1 else slice(g * hw, (g + 1) * hw)
        xg = x_ref[:, :, sl].astype(jnp.float32)                 # (N, TCg, hw)

        # Two-pass, per-channel batch statistics: batch-axis partial sums (VPU)
        # then a single cross-lane reduce (XLU); mean first, then centered moment.
        s1 = jnp.sum(jnp.sum(xg, axis=0, keepdims=True), axis=2, keepdims=True)
        mean = s1 * inv_n                                        # (1, TCg, 1)
        centered = xg - mean
        s2 = jnp.sum(jnp.sum(centered * centered, axis=0, keepdims=True),
                     axis=2, keepdims=True)
        inv_std = lax.rsqrt(s2 * inv_n + _EPS)                   # (1, TCg, 1)

        gamma = gb[:, :, 2 * g:2 * g + 1]                        # (N, TCg, 1)
        beta = gb[:, :, 2 * g + 1:2 * g + 2]                     # (N, TCg, 1)
        scale = gamma * inv_std                                  # fused affine
        o_ref[:, :, sl] = (centered * scale + beta).astype(o_ref.dtype)


def _round_up(v, m):
    return (v + m - 1) // m * m


def _tpu_policy():
    """Per-generation tiling policy: target block bytes, default scoped-VMEM
    limit, VMEM-limit cap, and minimum number of channel blocks (TC sharding)."""
    kind = ""
    try:
        kind = (jax.devices()[0].device_kind or "").lower()
    except Exception:  # defensive: never fail policy lookup
        pass
    if "v7" in kind:
        # 3.2 TB/s HBM, 64 MiB physical VMEM, 2 TensorCores/chip.
        return dict(target=4 << 20, default=32 << 20, cap=48 << 20, min_blocks=2)
    if "v6" in kind:
        return dict(target=6 << 20, default=32 << 20, cap=96 << 20, min_blocks=1)
    if "v5e" in kind or "v5 lite" in kind:
        # 0.82 TB/s: 2 MiB tiles already amortize the ~0.35us step overhead;
        # the 16 MiB default scoped limit is the thing to respect.
        return dict(target=2 << 20, default=16 << 20, cap=64 << 20, min_blocks=1)
    # Unknown / older chips: conservative.
    return dict(target=2 << 20, default=16 << 20, cap=32 << 20, min_blocks=1)


def _vmem_estimate(n, tcg, lane, hw, in_itemsize, out_itemsize):
    """Honest per-step VMEM footprint: double-buffered x in/out blocks, the
    lane-padded (N, TCg, 2G)->(N, TCg, 128) gamma/beta block, and ~4 segment-sized
    f32 temporaries (cast / centered / squared / fused output)."""
    x_in = n * tcg * lane * in_itemsize
    x_out = n * tcg * lane * out_itemsize
    gb = n * _round_up(tcg, 8) * 128 * 4
    temps = 4 * n * tcg * hw * 4
    return 2 * x_in + 2 * x_out + 2 * gb + temps


def _pick_channel_tile(n, cg, lane, hw, itemsize, policy):
    """Largest channel-group tile that (a) keeps the x block near the generation's
    byte target, (b) keeps the estimated footprint under cap/1.5 so the VMEM limit
    requested later always covers it, and (c) on v7x leaves >=2 grid steps so
    dimension_semantics=('parallel',) can shard across both TensorCores."""
    cands = [t for t in range(8, cg + 1, 8) if cg % t == 0]
    if cg not in cands:
        cands.append(cg)
    cands = sorted(set(cands))

    budget = policy["cap"] * 2 // 3                      # == cap / 1.5
    feasible = [t for t in cands
                if _vmem_estimate(n, t, lane, hw, itemsize, itemsize) <= budget]
    if not feasible:
        # TODO(synk): split HW onto an inner 'arbitrary' grid axis with s1/s2
        # accumulators instead of relying on a raised vmem_limit_bytes here.
        feasible = [min(cands)]
    multi = [t for t in feasible if cg // t >= policy["min_blocks"]]
    pool = multi or feasible
    within = [t for t in pool if n * t * lane * itemsize <= policy["target"]]
    return max(within) if within else min(pool)


def conditional_norm(x, class_id, embed_weight, *, channel_tile=None):
    """x: (N, C, H, W) NCHW; class_id: (N,) int; embed_weight: (n_class, 2*C)."""
    N, C, H, W = x.shape
    HW = H * W

    # Lane folding: pack G = 128//HW whole channels into the lane axis (a FREE
    # reshape of the contiguous NCHW buffer) so stores stay lane-dense for the
    # 8x8 / 4x4 stages.  Falls back to G=1 when HW >= 128 or shapes don't fold.
    if HW < 128 and 128 % HW == 0 and C % (128 // HW) == 0:
        G = 128 // HW
    else:
        G = 1  # TODO(synk): non-folding HW<128 shapes keep masked (vst.msk) stores.
    Cg = C // G
    L = G * HW

    # ---- glue (plain JAX on tiny arrays): embedding gather + (gamma|beta) pack ----
    emb = embed_weight[class_id].astype(jnp.float32)             # (N, 2C)
    gamma = 1.0 + emb[:, :C]                                     # (N, C)
    beta = emb[:, C:]                                            # (N, C)
    gb = jnp.stack([gamma.reshape(N, Cg, G), beta.reshape(N, Cg, G)], axis=-1)
    gb = gb.reshape(N, Cg, 2 * G)                                # lanes: g0,b0,g1,b1,...

    x3 = x.reshape(N, Cg, L)                                     # free reshape (contiguous)

    policy = _tpu_policy()
    tcg = (_pick_channel_tile(N, Cg, L, HW, x.dtype.itemsize, policy)
           if channel_tile is None else channel_tile)
    assert Cg % tcg == 0 and (tcg == Cg or tcg % 8 == 0), (Cg, tcg)
    grid = (Cg // tcg,)

    est = _vmem_estimate(N, tcg, L, HW, x.dtype.itemsize, x.dtype.itemsize)
    params = {"dimension_semantics": ("parallel",)}
    want = int(est * 3 // 2)
    if want > policy["default"]:
        # Never request less than the per-generation default scoped limit.
        params["vmem_limit_bytes"] = min(policy["cap"],
                                         max(policy["default"], want))

    kernel = functools.partial(_cond_norm_kernel, hw=HW, groups=G)
    out3 = pl.pallas_call(
        kernel,
        out_shape=jax.ShapeDtypeStruct((N, Cg, L), x.dtype),
        grid=grid,
        in_specs=[
            pl.BlockSpec((N, tcg, L), lambda c: (0, c, 0)),
            pl.BlockSpec((N, tcg, 2 * G), lambda c: (0, c, 0)),
        ],
        out_specs=pl.BlockSpec((N, tcg, L), lambda c: (0, c, 0)),
        compiler_params=pltpu.CompilerParams(**params),
    )(x3, gb)

    return out3.reshape(N, C, H, W)


def conditional_norm_reference(x, class_id, embed_weight):
    """Pure-JAX reference matching the PyTorch module (training-mode BN)."""
    C = x.shape[1]
    mean = jnp.mean(x, axis=(0, 2, 3), keepdims=True)
    var = jnp.var(x, axis=(0, 2, 3), keepdims=True)              # biased, like BN
    out = (x - mean) / jnp.sqrt(var + _EPS)
    emb = embed_weight[class_id]
    gamma = 1.0 + emb[:, :C]
    beta = emb[:, C:]
    return gamma[:, :, None, None] * out + beta[:, :, None, None]


def _run_case(fn, key, N, C, H, W, n_class, nontrivial_embed, channel_tile=None):
    kx, kc, kw = jax.random.split(key, 3)
    x = jax.random.normal(kx, (N, C, H, W), dtype=jnp.float32)
    class_id = jax.random.randint(kc, (N,), 0, n_class)
    # Deterministic parameter init exactly as the module's __init__:
    #   embed.weight[:, :C] = 1 ; embed.weight[:, C:] = 0
    embed_weight = jnp.concatenate(
        [jnp.ones((n_class, C), jnp.float32), jnp.zeros((n_class, C), jnp.float32)],
        axis=1)
    if nontrivial_embed:
        embed_weight = embed_weight + 0.1 * jax.random.normal(
            kw, (n_class, 2 * C), dtype=jnp.float32)

    out = jax.block_until_ready(
        fn(x, class_id, embed_weight, channel_tile=channel_tile))
    ref = conditional_norm_reference(x, class_id, embed_weight)
    assert out.shape == (N, C, H, W)
    err = float(jnp.max(jnp.abs(out - ref)))
    assert jnp.allclose(out, ref, atol=1e-4, rtol=1e-4), (N, C, H, W, err)


if __name__ == "__main__":
    key = jax.random.PRNGKey(0)
    n_class = 10
    fn = jax.jit(conditional_norm, static_argnames=("channel_tile",))
    keys = jax.random.split(key, 4)

    # 16x16 stage (HW=256 >= 128): no folding, single channel block, dense stores.
    _run_case(fn, keys[0], N=2, C=8, H=16, W=16, n_class=n_class,
              nontrivial_embed=False)
    # 8x8 stage (HW=64): 2 channels folded per 128-lane row.
    _run_case(fn, keys[1], N=2, C=16, H=8, W=8, n_class=n_class,
              nontrivial_embed=True)
    # 4x4 stage (HW=16): 8 channels folded per 128-lane row; TCg == Cg < 8 path.
    _run_case(fn, keys[2], N=2, C=32, H=4, W=4, n_class=n_class,
              nontrivial_embed=True)
    # Multi-block grid on the 'parallel' channel axis (grid=(2,)).
    _run_case(fn, keys[3], N=2, C=32, H=16, W=16, n_class=n_class,
              nontrivial_embed=True, channel_tile=16)

    print("KERNEL_OK")
</pallas_src>

<mosaic_0001>
module attributes {stable_mosaic.version = 11 : i64} {
  func.func @_cond_norm_kernel(%arg0: i32, %arg1: memref<2x8x256xf32, #tpu.memory_space<vmem>>, %arg2: memref<2x8x2xf32, #tpu.memory_space<vmem>>, %arg3: memref<2x8x256xf32, #tpu.memory_space<vmem>>) attributes {dimension_semantics = [#tpu.dimension_semantics<parallel>], iteration_bounds = array<i64: 1>, scalar_prefetch = 0 : i64, scratch_operands = 0 : i64, tpu.core_type = #tpu.core_type<tc>, window_params = [{transform_indices = @transform_0, window_bounds = array<i64: 2, 8, 256>}, {transform_indices = @transform_1, window_bounds = array<i64: 2, 8, 2>}, {transform_indices = @transform_2, window_bounds = array<i64: 2, 8, 256>}]} {
    %c0 = arith.constant 0 : index
    %c0_0 = arith.constant 0 : index
    %c0_1 = arith.constant 0 : index
    %0 = vector.load %arg2[%c0, %c0_0, %c0_1] : memref<2x8x2xf32, #tpu.memory_space<vmem>>, vector<2x8x2xf32>
    %c0_2 = arith.constant 0 : index
    %c0_3 = arith.constant 0 : index
    %c0_4 = arith.constant 0 : index
    %1 = vector.load %arg1[%c0_2, %c0_3, %c0_4] : memref<2x8x256xf32, #tpu.memory_space<vmem>>, vector<2x8x256xf32>
    %cst = arith.constant dense<0.000000e+00> : vector<8x256xf32>
    %2 = vector.multi_reduction <add>, %1, %cst [0] : vector<2x8x256xf32> to vector<8x256xf32>
    %3 = vector.shape_cast %2 : vector<8x256xf32> to vector<1x8x256xf32>
    %cst_5 = arith.constant dense<0.000000e+00> : vector<1x8xf32>
    %4 = vector.multi_reduction <add>, %3, %cst_5 [2] : vector<1x8x256xf32> to vector<1x8xf32>
    %5 = vector.shape_cast %4 : vector<1x8xf32> to vector<1x8x1xf32>
    %cst_6 = arith.constant 0.001953125 : f32
    %6 = vector.broadcast %cst_6 : f32 to vector<1x8x1xf32>
    %7 = arith.mulf %5, %6 : vector<1x8x1xf32>
    %8 = vector.broadcast %7 : vector<1x8x1xf32> to vector<2x8x256xf32>
    %9 = arith.subf %1, %8 : vector<2x8x256xf32>
    %10 = arith.mulf %9, %9 : vector<2x8x256xf32>
    %cst_7 = arith.constant dense<0.000000e+00> : vector<8x256xf32>
    %11 = vector.multi_reduction <add>, %10, %cst_7 [0] : vector<2x8x256xf32> to vector<8x256xf32>
    %12 = vector.shape_cast %11 : vector<8x256xf32> to vector<1x8x256xf32>
    %cst_8 = arith.constant dense<0.000000e+00> : vector<1x8xf32>
    %13 = vector.multi_reduction <add>, %12, %cst_8 [2] : vector<1x8x256xf32> to vector<1x8xf32>
    %14 = vector.shape_cast %13 : vector<1x8xf32> to vector<1x8x1xf32>
    %cst_9 = arith.constant 0.001953125 : f32
    %15 = vector.broadcast %cst_9 : f32 to vector<1x8x1xf32>
    %16 = arith.mulf %14, %15 : vector<1x8x1xf32>
    %cst_10 = arith.constant 9.99999974E-6 : f32
    %17 = vector.broadcast %cst_10 : f32 to vector<1x8x1xf32>
    %18 = arith.addf %16, %17 : vector<1x8x1xf32>
    %19 = math.rsqrt %18 : vector<1x8x1xf32>
    %20 = vector.extract_strided_slice %0 {offsets = [0, 0, 0], sizes = [2, 8, 1], strides = [1, 1, 1]} : vector<2x8x2xf32> to vector<2x8x1xf32>
    %21 = vector.extract_strided_slice %0 {offsets = [0, 0, 1], sizes = [2, 8, 1], strides = [1, 1, 1]} : vector<2x8x2xf32> to vector<2x8x1xf32>
    %22 = vector.broadcast %19 : vector<1x8x1xf32> to vector<2x8x1xf32>
    %23 = arith.mulf %20, %22 : vector<2x8x1xf32>
    %24 = vector.broadcast %23 : vector<2x8x1xf32> to vector<2x8x256xf32>
    %25 = arith.mulf %9, %24 : vector<2x8x256xf32>
    %26 = vector.broadcast %21 : vector<2x8x1xf32> to vector<2x8x256xf32>
    %27 = arith.addf %25, %26 : vector<2x8x256xf32>
    %c0_11 = arith.constant 0 : index
    %c0_12 = arith.constant 0 : index
    %c0_13 = arith.constant 0 : index
    %28 = vector.load %arg3[%c0_11, %c0_12, %c0_13] : memref<2x8x256xf32, #tpu.memory_space<vmem>>, vector<2x8x256xf32>
    tpu.vector_store %arg3[%c0_11, %c0_12, %c0_13], %27 {strides = array<i32>} : memref<2x8x256xf32, #tpu.memory_space<vmem>>, vector<2x8x256xf32>,
    return
  }
  func.func @transform_0(%arg0: i32) -> (i32, i32, i32) {
    %c0_i32 = arith.constant 0 : i32
    %c0_i32_0 = arith.constant 0 : i32
    %c0_i32_1 = arith.constant 0 : i32
    return %c0_i32, %arg0, %c0_i32_0 : i32, i32, i32
  }
  func.func @transform_1(%arg0: i32) -> (i32, i32, i32) {
    %c0_i32 = arith.constant 0 : i32
    %c0_i32_0 = arith.constant 0 : i32
    %c0_i32_1 = arith.constant 0 : i32
    return %c0_i32, %arg0, %c0_i32_0 : i32, i32, i32
  }
  func.func @transform_2(%arg0: i32) -> (i32, i32, i32) {
    %c0_i32 = arith.constant 0 : i32
    %c0_i32_0 = arith.constant 0 : i32
    %c0_i32_1 = arith.constant 0 : i32
    return %c0_i32, %arg0, %c0_i32_0 : i32, i32, i32
  }
}

</mosaic_0001>

<bundles_post_ra>
// kernel: conditional_norm.1
= control target key start
LH: loop header
LB: loop body
LE: loop exit
PB: predicated region body
PF: predicated region fallthrough
CT: control target
= control target key end

     0   :  { %v84_v20 = vmov 0   ;;  %v85_v22 = vmov 1   ;;  %s131_s0 = inlined_call_operand.vmem [shape: f32[2,8,256], index: 0, kind: input, shape index: {}]   ;;  %s132_s1 = inlined_call_operand.vmem [shape: f32[2,8,2], index: 1, kind: input, shape index: {}]   ;;  %s133_s2 = inlined_call_operand.vmem [shape: f32[2,8,256], index: 2, kind: output, shape index: {}]  }
   0x1   :  { %v13_v0 = vld [vmem:[%s131_s0] sm:$0xff]  ;;  %v14_v1 = vld [vmem:[%s131_s0 + $0x8] sm:$0xff]  ;;  %v15_v2 = vld [vmem:[%s131_s0 + $0x10] sm:$0xff]  ;;  %79 = vset.pattern.permute.xlu1 %v84_v20  ;;  %80 = vset.pattern.permute.xlu0 %v85_v22 }
   0x2   :  { %v16_v3 = vld [vmem:[%s131_s0 + $0x18] sm:$0xff]  ;;  %v17_v4 = vadd.f32 %v15_v2, %v13_v0  ;;  %v11_v21 = vld [vmem:[%s132_s1] sm:$0xff]  ;;  %v12_v28 = vld [vmem:[%s132_s1 + $0x8] sm:$0xff] }
   0x3   :  { %v18_v5 = vadd.f32 %v16_v3, %v14_v1 }
   0x5   :  { %v19_v6 = vadd.f32 %v18_v5, %v17_v4 }
   0x7   :  { %20 = vadd.xlane.f32.xlu0 %v19_v6 }
  0x94   :  { %v21_v7 = vpop.xlane.xlu0 %20 }
  0x95   :  { %v22_v8 = vmul.f32 0.001953125, %v21_v7 }
  0x97   :  { %v23_v9 = vsub.f32 %v13_v0, %v22_v8  ;;  %v24_v10 = vsub.f32 %v14_v1, %v22_v8  ;;  %v25_v11 = vsub.f32 %v15_v2, %v22_v8  ;;  %v26_v12 = vsub.f32 %v16_v3, %v22_v8 }
  0x99   :  { %v27_v13 = vmul.f32 %v23_v9, %v23_v9  ;;  %v28_v14 = vmul.f32 %v24_v10, %v24_v10  ;;  %v29_v15 = vmul.f32 %v25_v11, %v25_v11  ;;  %v30_v16 = vmul.f32 %v26_v12, %v26_v12 }
  0x9b   :  { %v31_v17 = vadd.f32 %v29_v15, %v27_v13  ;;  %v32_v18 = vadd.f32 %v30_v16, %v28_v14 }
  0x9d   :  { %v33_v19 = vadd.f32 %v32_v18, %v31_v17 }
  0x9f   :  { %34 = vadd.xlane.f32.xlu0 %v33_v19 }
  0xb5   :  { %57 = vperm.xlu0 %80, %v11_v21  }
 0x12c   :  { %v35_v23 = vpop.xlane.xlu0 %34 }
 0x12d   :  { %v36_v24 = vmul.f32 0.001953125, %v35_v23 }
 0x12f   :  { %v37_v25 = vadd.f32 1e-05, %v36_v24 }
 0x131   :  { %82 = vrsqrt.f32 %v37_v25 }
 0x134   :  { %v58_v31 = vpop.permute.xlu0 %57 }
 0x13b   :  { %v83_v26 = vpop.eup %82 }
 0x13c   :  { %v39_v27 = vmul.f32 %v83_v26, %v11_v21  ;;  %v40_v29 = vmul.f32 %v83_v26, %v12_v28 }
 0x13e   :  { %43 = vperm.xlu1 %79, %v39_v27  }
 0x142   :  { %48 = vperm.xlu1 %79, %v40_v29  }
 0x146   :  { %81 = vset.pattern.permute.xlu1 %v85_v22 }
 0x147   :  { %62 = vperm.xlu1 %81, %v12_v28  }
 0x1bd   :  { %v44_v30 = vpop.permute.xlu1 %43 }
 0x1be   :  { %v51_v32 = vmul.f32 %v44_v30, %v23_v9  ;;  %v52_v33 = vmul.f32 %v44_v30, %v24_v10 }
 0x1c0   :  { %v65_v34 = vadd.f32 %v58_v31, %v51_v32  ;;  %v66_v35 = vadd.f32 %v58_v31, %v52_v33 }
 0x1c1   :  { %v49_v36 = vpop.permute.xlu1 %48 }
 0x1c2   :  { %69 = vst [vmem:[%s133_s2] sm:$0xff] %v65_v34  ;;  %70 = vst [vmem:[%s133_s2 + $0x8] sm:$0xff] %v66_v35  ;;  %v53_v37 = vmul.f32 %v49_v36, %v25_v11  ;;  %v54_v38 = vmul.f32 %v49_v36, %v26_v12 }
 0x1c6   :  { %v63_v39 = vpop.permute.xlu1 %62 }
 0x1c7   :  { %v67_v40 = vadd.f32 %v63_v39, %v53_v37  ;;  %v68_v41 = vadd.f32 %v63_v39, %v54_v38 }
 0x1c9   :  { %71 = vst [vmem:[%s133_s2 + $0x10] sm:$0xff] %v67_v40  ;;  %72 = vst [vmem:[%s133_s2 + $0x18] sm:$0xff] %v68_v41 }

</bundles_post_ra>
